<compile_context>
chip_gen: v7x
topology: tpu7x:2x2x1
jax: 0.10.0
libtpu: 0.0.40
codegen_flags: <defaults>
</compile_context>

<pallas_src>
import functools

import jax
import jax.numpy as jnp
from jax.experimental import pallas as pl
from jax.experimental.pallas import tpu as pltpu

_EPS = 1e-6  # torch pairwise_distance default eps (added to the difference)


def _metric_loss_kernel(anc_ref, pos_ref, neg_ref,
                        anc_i_ref, pos_i_ref, neg_i_ref,
                        out_ref, *, margin):
    # Cast inside pdist (per use) rather than hoisting whole-tile f32 copies of
    # anc/pos/neg: only one (TB, D) f32 temporary is live at a time, keeping the
    # VMEM / internal-scratch footprint within the budget used to pick TB
    # (matters most under v7x's 64 MiB-per-TC VMEM).  Re-reading anc/pos/neg
    # from VMEM is cheap (vld slot has huge slack in this mem-bound kernel).
    def pdist(a_ref, b_ref):
        d = a_ref[...].astype(jnp.float32) - b_ref[...].astype(jnp.float32) + _EPS
        # L2 norm along the feature (lane) axis -> (TB, 1), f32 accumulation.
        return jnp.sqrt(jnp.sum(d * d, axis=-1, keepdims=True))

    d_AP = pdist(anc_ref, pos_ref)
    d_AN = pdist(anc_ref, neg_ref)
    d_AI = pdist(anc_ref, anc_i_ref)
    d_PI = pdist(pos_ref, pos_i_ref)
    d_NI = pdist(neg_ref, neg_i_ref)

    ro, tau, xi = 0.1, 1.0, 1.0
    g1 = ro * d_AP
    # Softplus(beta=1, threshold=20000) == exact log(1 + exp(x)); stable form.
    g2 = tau * jnp.logaddexp(0.0, d_AP - d_AN + margin)
    g3 = xi * (d_AI + d_PI + d_NI) * (1.0 / 3.0)

    # Per-row loss for this batch tile.
    out_ref[...] = g1 * g1 + g2 * g2 + g3 * g3


def _round_up(x, m):
    return (x + m - 1) // m * m


def _sublane_multiple(dtype):
    # Rows per natively packed sublane tile: f32 -> 8, bf16/f16 -> 16, 8-bit -> 32.
    return {4: 8, 2: 16, 1: 32}.get(jnp.dtype(dtype).itemsize, 8)


def _vmem_capacity_bytes():
    try:
        return int(pltpu.get_tpu_info().vmem_capacity_bytes)
    except Exception:
        return 64 * 1024 * 1024  # conservative fallback: v7x per-TensorCore VMEM


def metric_loss(anc, pos, neg, anc_ideal, pos_ideal, neg_ideal, *,
                margin=1.0, tile_b=None, input_buffers=2,
                vmem_limit_bytes=None):
    """Pallas implementation of MetricLoss.forward. Returns a scalar."""
    B, D = anc.shape
    itemsize = jnp.dtype(anc.dtype).itemsize
    sub = _sublane_multiple(anc.dtype)
    b_pad = _round_up(B, sub)
    nbuf = max(2, int(input_buffers))

    # Generation-aware VMEM limit:
    #   128 MiB parts (v5e/v6e) -> 72 MiB limit (v5e scoped default is only 16 MiB,
    #   so an explicit limit is required either way); 64 MiB/TC (v7x) -> 32 MiB.
    if vmem_limit_bytes is None:
        cap = _vmem_capacity_bytes()
        vmem_limit_bytes = (72 if cap >= 96 * 1024 * 1024 else 32) * 1024 * 1024
    vmem_limit_bytes = int(vmem_limit_bytes)

    if tile_b is None:
        # VMEM per batch row per grid step:
        #   6 inputs x nbuf pipeline buffers x D x itemsize
        # + one live (TB, D) f32 pdist diff temporary (4 * D bytes/row).
        # Keep ~25% of the limit as headroom for output buffers / internal scratch.
        per_row = 6 * nbuf * D * itemsize + 4 * D
        budget = (vmem_limit_bytes * 3) // 4
        tb = max(sub, (budget // per_row) // sub * sub)   # no artificial row cap
        tb = min(tb, b_pad)
        # Ensure >= 2 grid steps when B allows, so the "parallel" axis can split
        # across both TensorCores on v7x (negligible cost on v5e/v6e).
        if b_pad >= 2 * sub:
            tb = min(tb, _round_up(pl.cdiv(b_pad, 2), sub))
    else:
        tb = min(_round_up(max(int(tile_b), 1), sub), b_pad)

    grid = (pl.cdiv(B, tb),)
    idx = lambda i: (i, 0)

    if nbuf != 2 and hasattr(pl, "Buffered"):
        # Deeper input pipelining absorbs DMA-descriptor / HBM arbitration jitter
        # across the 6 concurrent streams; buffer count is already in the budget.
        in_spec = pl.BlockSpec((tb, D), idx, pipeline_mode=pl.Buffered(nbuf))
    else:
        in_spec = pl.BlockSpec((tb, D), idx)
    out_spec = pl.BlockSpec((tb, 1), idx)

    kernel = functools.partial(_metric_loss_kernel, margin=float(margin))

    per_row_loss = pl.pallas_call(
        kernel,
        out_shape=jax.ShapeDtypeStruct((B, 1), jnp.float32),
        grid=grid,
        in_specs=[in_spec] * 6,
        out_specs=out_spec,
        compiler_params=pltpu.CompilerParams(
            # No carried state across batch tiles -> parallel (both TCs on v7x).
            dimension_semantics=("parallel",),
            vmem_limit_bytes=vmem_limit_bytes,
        ),
    )(anc, pos, neg, anc_ideal, pos_ideal, neg_ideal)

    # Tiny final reduction (B f32 values) stays in plain XLA.
    return jnp.mean(per_row_loss)


def _reference(anc, pos, neg, anc_i, pos_i, neg_i, margin=1.0):
    def pdist(a, b):
        d = a.astype(jnp.float32) - b.astype(jnp.float32) + _EPS
        return jnp.sqrt(jnp.sum(d * d, axis=-1))
    d_AP = pdist(anc, pos)
    d_AN = pdist(anc, neg)
    g1 = 0.1 * d_AP
    g2 = jnp.logaddexp(0.0, d_AP - d_AN + margin)
    g3 = (pdist(anc, anc_i) + pdist(pos, pos_i) + pdist(neg, neg_i)) / 3.0
    return jnp.mean(g1 * g1 + g2 * g2 + g3 * g3)


if __name__ == "__main__":
    margin = 1.0  # MetricLoss(margin=1.0)
    key = jax.random.PRNGKey(0)

    def make_inputs(B, D, dtype):
        ks = jax.random.split(key, 6)
        return tuple(jax.random.normal(k, (B, D), dtype=dtype) for k in ks)

    # Case 1: batch NOT a multiple of the tile -> exercises the padded last tile.
    xs = make_inputs(20, 128, jnp.float32)
    loss = metric_loss(*xs, margin=margin, tile_b=8)     # grid of 3 batch tiles
    jax.block_until_ready(loss)
    ref = _reference(*xs, margin=margin)
    assert jnp.allclose(loss, ref, rtol=1e-5, atol=1e-5), (loss, ref)

    # Case 2: auto tile size (single tile at this tiny batch).
    xs = make_inputs(8, 256, jnp.float32)
    loss = metric_loss(*xs, margin=margin)
    jax.block_until_ready(loss)
    ref = _reference(*xs, margin=margin)
    assert jnp.allclose(loss, ref, rtol=1e-5, atol=1e-5), (loss, ref)

    # Case 3: bf16 inputs -> dtype-aware sublane rounding (16) + f32 accumulation.
    xs = make_inputs(32, 128, jnp.bfloat16)
    loss = metric_loss(*xs, margin=margin, tile_b=16)    # grid of 2 batch tiles
    jax.block_until_ready(loss)
    ref = _reference(*xs, margin=margin)
    assert jnp.allclose(loss, ref, rtol=1e-4, atol=1e-4), (loss, ref)

    # Case 4: auto tile with the >=2-step clamp and 3-deep input buffering.
    xs = make_inputs(48, 128, jnp.float32)
    loss = metric_loss(*xs, margin=margin, input_buffers=3)  # grid of 2 batch tiles
    jax.block_until_ready(loss)
    ref = _reference(*xs, margin=margin)
    assert jnp.allclose(loss, ref, rtol=1e-5, atol=1e-5), (loss, ref)

    print("KERNEL_OK")
</pallas_src>

<mosaic_0001>
module attributes {stable_mosaic.version = 11 : i64} {
  func.func @_metric_loss_kernel(%arg0: i32, %arg1: memref<8x128xf32, #tpu.memory_space<vmem>>, %arg2: memref<8x128xf32, #tpu.memory_space<vmem>>, %arg3: memref<8x128xf32, #tpu.memory_space<vmem>>, %arg4: memref<8x128xf32, #tpu.memory_space<vmem>>, %arg5: memref<8x128xf32, #tpu.memory_space<vmem>>, %arg6: memref<8x128xf32, #tpu.memory_space<vmem>>, %arg7: memref<8x1xf32, #tpu.memory_space<vmem>>) attributes {dimension_semantics = [#tpu.dimension_semantics<parallel>], iteration_bounds = array<i64: 3>, scalar_prefetch = 0 : i64, scratch_operands = 0 : i64, tpu.core_type = #tpu.core_type<tc>, window_params = [{transform_indices = @transform_0, window_bounds = array<i64: 8, 128>}, {transform_indices = @transform_1, window_bounds = array<i64: 8, 128>}, {transform_indices = @transform_2, window_bounds = array<i64: 8, 128>}, {transform_indices = @transform_3, window_bounds = array<i64: 8, 128>}, {transform_indices = @transform_4, window_bounds = array<i64: 8, 128>}, {transform_indices = @transform_5, window_bounds = array<i64: 8, 128>}, {transform_indices = @transform_6, window_bounds = array<i64: 8, 1>}]} {
    %c0 = arith.constant 0 : index
    %c0_0 = arith.constant 0 : index
    %0 = vector.load %arg1[%c0, %c0_0] : memref<8x128xf32, #tpu.memory_space<vmem>>, vector<8x128xf32>
    %c0_1 = arith.constant 0 : index
    %c0_2 = arith.constant 0 : index
    %1 = vector.load %arg2[%c0_1, %c0_2] : memref<8x128xf32, #tpu.memory_space<vmem>>, vector<8x128xf32>
    %2 = arith.subf %0, %1 : vector<8x128xf32>
    %cst = arith.constant 9.99999997E-7 : f32
    %3 = vector.broadcast %cst : f32 to vector<8x128xf32>
    %4 = arith.addf %2, %3 : vector<8x128xf32>
    %5 = arith.mulf %4, %4 : vector<8x128xf32>
    %cst_3 = arith.constant dense<0.000000e+00> : vector<8xf32>
    %6 = vector.multi_reduction <add>, %5, %cst_3 [1] : vector<8x128xf32> to vector<8xf32>
    %7 = vector.shape_cast %6 : vector<8xf32> to vector<8x1xf32>
    %8 = math.sqrt %7 : vector<8x1xf32>
    %c0_4 = arith.constant 0 : index
    %c0_5 = arith.constant 0 : index
    %9 = vector.load %arg1[%c0_4, %c0_5] : memref<8x128xf32, #tpu.memory_space<vmem>>, vector<8x128xf32>
    %c0_6 = arith.constant 0 : index
    %c0_7 = arith.constant 0 : index
    %10 = vector.load %arg3[%c0_6, %c0_7] : memref<8x128xf32, #tpu.memory_space<vmem>>, vector<8x128xf32>
    %11 = arith.subf %9, %10 : vector<8x128xf32>
    %cst_8 = arith.constant 9.99999997E-7 : f32
    %12 = vector.broadcast %cst_8 : f32 to vector<8x128xf32>
    %13 = arith.addf %11, %12 : vector<8x128xf32>
    %14 = arith.mulf %13, %13 : vector<8x128xf32>
    %cst_9 = arith.constant dense<0.000000e+00> : vector<8xf32>
    %15 = vector.multi_reduction <add>, %14, %cst_9 [1] : vector<8x128xf32> to vector<8xf32>
    %16 = vector.shape_cast %15 : vector<8xf32> to vector<8x1xf32>
    %17 = math.sqrt %16 : vector<8x1xf32>
    %c0_10 = arith.constant 0 : index
    %c0_11 = arith.constant 0 : index
    %18 = vector.load %arg1[%c0_10, %c0_11] : memref<8x128xf32, #tpu.memory_space<vmem>>, vector<8x128xf32>
    %c0_12 = arith.constant 0 : index
    %c0_13 = arith.constant 0 : index
    %19 = vector.load %arg4[%c0_12, %c0_13] : memref<8x128xf32, #tpu.memory_space<vmem>>, vector<8x128xf32>
    %20 = arith.subf %18, %19 : vector<8x128xf32>
    %cst_14 = arith.constant 9.99999997E-7 : f32
    %21 = vector.broadcast %cst_14 : f32 to vector<8x128xf32>
    %22 = arith.addf %20, %21 : vector<8x128xf32>
    %23 = arith.mulf %22, %22 : vector<8x128xf32>
    %cst_15 = arith.constant dense<0.000000e+00> : vector<8xf32>
    %24 = vector.multi_reduction <add>, %23, %cst_15 [1] : vector<8x128xf32> to vector<8xf32>
    %25 = vector.shape_cast %24 : vector<8xf32> to vector<8x1xf32>
    %26 = math.sqrt %25 : vector<8x1xf32>
    %c0_16 = arith.constant 0 : index
    %c0_17 = arith.constant 0 : index
    %27 = vector.load %arg2[%c0_16, %c0_17] : memref<8x128xf32, #tpu.memory_space<vmem>>, vector<8x128xf32>
    %c0_18 = arith.constant 0 : index
    %c0_19 = arith.constant 0 : index
    %28 = vector.load %arg5[%c0_18, %c0_19] : memref<8x128xf32, #tpu.memory_space<vmem>>, vector<8x128xf32>
    %29 = arith.subf %27, %28 : vector<8x128xf32>
    %cst_20 = arith.constant 9.99999997E-7 : f32
    %30 = vector.broadcast %cst_20 : f32 to vector<8x128xf32>
    %31 = arith.addf %29, %30 : vector<8x128xf32>
    %32 = arith.mulf %31, %31 : vector<8x128xf32>
    %cst_21 = arith.constant dense<0.000000e+00> : vector<8xf32>
    %33 = vector.multi_reduction <add>, %32, %cst_21 [1] : vector<8x128xf32> to vector<8xf32>
    %34 = vector.shape_cast %33 : vector<8xf32> to vector<8x1xf32>
    %35 = math.sqrt %34 : vector<8x1xf32>
    %c0_22 = arith.constant 0 : index
    %c0_23 = arith.constant 0 : index
    %36 = vector.load %arg3[%c0_22, %c0_23] : memref<8x128xf32, #tpu.memory_space<vmem>>, vector<8x128xf32>
    %c0_24 = arith.constant 0 : index
    %c0_25 = arith.constant 0 : index
    %37 = vector.load %arg6[%c0_24, %c0_25] : memref<8x128xf32, #tpu.memory_space<vmem>>, vector<8x128xf32>
    %38 = arith.subf %36, %37 : vector<8x128xf32>
    %cst_26 = arith.constant 9.99999997E-7 : f32
    %39 = vector.broadcast %cst_26 : f32 to vector<8x128xf32>
    %40 = arith.addf %38, %39 : vector<8x128xf32>
    %41 = arith.mulf %40, %40 : vector<8x128xf32>
    %cst_27 = arith.constant dense<0.000000e+00> : vector<8xf32>
    %42 = vector.multi_reduction <add>, %41, %cst_27 [1] : vector<8x128xf32> to vector<8xf32>
    %43 = vector.shape_cast %42 : vector<8xf32> to vector<8x1xf32>
    %44 = math.sqrt %43 : vector<8x1xf32>
    %cst_28 = arith.constant 1.000000e-01 : f32
    %45 = vector.broadcast %cst_28 : f32 to vector<8x1xf32>
    %46 = arith.mulf %45, %8 : vector<8x1xf32>
    %47 = arith.subf %8, %17 : vector<8x1xf32>
    %cst_29 = arith.constant 1.000000e+00 : f32
    %48 = vector.broadcast %cst_29 : f32 to vector<8x1xf32>
    %49 = arith.addf %47, %48 : vector<8x1xf32>
    %cst_30 = arith.constant 0.000000e+00 : f32
    %50 = vector.broadcast %cst_30 : f32 to vector<8x1xf32>
    %51 = arith.maximumf %50, %49 : vector<8x1xf32>
    %52 = vector.broadcast %cst_30 : f32 to vector<8x1xf32>
    %53 = arith.subf %52, %49 : vector<8x1xf32>
    %54 = arith.cmpf one, %53, %53 : vector<8x1xf32>
    %55 = vector.broadcast %cst_30 : f32 to vector<8x1xf32>
    %56 = arith.addf %55, %49 : vector<8x1xf32>
    %57 = math.absf %53 : vector<8x1xf32>
    %cst_31 = arith.constant 0.000000e+00 : f32
    %58 = vector.broadcast %cst_31 : f32 to vector<8x1xf32>
    %59 = arith.subf %58, %57 : vector<8x1xf32>
    %60 = math.exp %59 : vector<8x1xf32>
    %61 = math.log1p %60 : vector<8x1xf32>
    %62 = arith.addf %51, %61 : vector<8x1xf32>
    %63 = arith.select %54, %56, %62 : vector<8x1xi1>, vector<8x1xf32>
    %cst_32 = arith.constant 1.000000e+00 : f32
    %64 = vector.broadcast %cst_32 : f32 to vector<8x1xf32>
    %65 = arith.mulf %64, %63 : vector<8x1xf32>
    %66 = arith.addf %26, %35 : vector<8x1xf32>
    %67 = arith.addf %66, %44 : vector<8x1xf32>
    %cst_33 = arith.constant 1.000000e+00 : f32
    %68 = vector.broadcast %cst_33 : f32 to vector<8x1xf32>
    %69 = arith.mulf %68, %67 : vector<8x1xf32>
    %cst_34 = arith.constant 0.333333343 : f32
    %70 = vector.broadcast %cst_34 : f32 to vector<8x1xf32>
    %71 = arith.mulf %69, %70 : vector<8x1xf32>
    %72 = arith.mulf %46, %46 : vector<8x1xf32>
    %73 = arith.mulf %65, %65 : vector<8x1xf32>
    %74 = arith.addf %72, %73 : vector<8x1xf32>
    %75 = arith.mulf %71, %71 : vector<8x1xf32>
    %76 = arith.addf %74, %75 : vector<8x1xf32>
    %c0_35 = arith.constant 0 : index
    %c0_36 = arith.constant 0 : index
    %77 = vector.load %arg7[%c0_35, %c0_36] : memref<8x1xf32, #tpu.memory_space<vmem>>, vector<8x1xf32>
    tpu.vector_store %arg7[%c0_35, %c0_36], %76 {strides = array<i32>} : memref<8x1xf32, #tpu.memory_space<vmem>>, vector<8x1xf32>,
    return
  }
  func.func @transform_0(%arg0: i32) -> (i32, i32) {
    %c0_i32 = arith.constant 0 : i32
    %c0_i32_0 = arith.constant 0 : i32
    return %arg0, %c0_i32 : i32, i32
  }
  func.func @transform_1(%arg0: i32) -> (i32, i32) {
    %c0_i32 = arith.constant 0 : i32
    %c0_i32_0 = arith.constant 0 : i32
    return %arg0, %c0_i32 : i32, i32
  }
  func.func @transform_2(%arg0: i32) -> (i32, i32) {
    %c0_i32 = arith.constant 0 : i32
    %c0_i32_0 = arith.constant 0 : i32
    return %arg0, %c0_i32 : i32, i32
  }
  func.func @transform_3(%arg0: i32) -> (i32, i32) {
    %c0_i32 = arith.constant 0 : i32
    %c0_i32_0 = arith.constant 0 : i32
    return %arg0, %c0_i32 : i32, i32
  }
  func.func @transform_4(%arg0: i32) -> (i32, i32) {
    %c0_i32 = arith.constant 0 : i32
    %c0_i32_0 = arith.constant 0 : i32
    return %arg0, %c0_i32 : i32, i32
  }
  func.func @transform_5(%arg0: i32) -> (i32, i32) {
    %c0_i32 = arith.constant 0 : i32
    %c0_i32_0 = arith.constant 0 : i32
    return %arg0, %c0_i32 : i32, i32
  }
  func.func @transform_6(%arg0: i32) -> (i32, i32) {
    %c0_i32 = arith.constant 0 : i32
    %c0_i32_0 = arith.constant 0 : i32
    return %arg0, %c0_i32 : i32, i32
  }
}

</mosaic_0001>

<bundles_post_ra>
// kernel: tpu_custom_call.1
= control target key start
LH: loop header
LB: loop body
LE: loop exit
PB: predicated region body
PF: predicated region fallthrough
CT: control target
= control target key end

     0   :  { %s1362_s0 = inlined_call_operand.hbm [shape: f32[20,128], index: 0, kind: input, shape index: {}]   ;;  %s1363_s1 = inlined_call_operand.hbm [shape: f32[20,128], index: 1, kind: input, shape index: {}]   ;;  %s1364_s2 = inlined_call_operand.hbm [shape: f32[20,128], index: 2, kind: input, shape index: {}]   ;;  %s1365_s3 = inlined_call_operand.hbm [shape: f32[20,128], index: 3, kind: input, shape index: {}]   ;;  %s1366_s4 = inlined_call_operand.hbm [shape: f32[20,128], index: 4, kind: input, shape index: {}]   ;;  %s1367_s5 = inlined_call_operand.hbm [shape: f32[20,128], index: 5, kind: input, shape index: {}]   ;;  %s1368_s6 = inlined_call_operand.vmem [shape: f32[20,1], index: 6, kind: output, shape index: {}]  }
   0x1   :  { %1372 = sst [smem:[#allocation16_spill]] %s1363_s1 }
   0x2   :  { %1373 = sst [smem:[#allocation17_spill]] %s1365_s3 }
   0x3   :  { %11 = vsyncpa [#allocation3], 0 }
   0x4   :  { %13 = vsyncpa [#allocation3 + $0x1], 0 }
   0x5   :  { %14 = vsyncpa [#allocation5], 0 }
   0x6   :  { %16 = vsyncpa [#allocation5 + $0x1], 0 }
   0x7   :  { %17 = vsyncpa [#allocation8], 0 }
   0x8   :  { %19 = vsyncpa [#allocation8 + $0x1], 0 }
   0x9   :  { %20 = vsyncpa [#allocation11], 0 }
   0xa   :  { %22 = vsyncpa [#allocation11 + $0x1], 0  ;;  %s1090_s21 = smov 0   ;;  %s1092_s22 = smov 0  }
   0xb   :  { %s1094_s23 = smov 0   ;;  %s1096_s24 = smov 0  }
   0xc LB: > { %s1109_s25 = sadd.s32 4294967295, %s1047_s24   ;;  %s1112_s26 = sadd.s32 1, %s1047_s24   ;;  %s1047_s24 = sphi %s1096_s24, %s1392_s24   ;;  %s1043_s23 = sphi %s1094_s23, %s1391_s23   ;;  %s1039_s22 = sphi %s1092_s22, %s1390_s22   ;;  %s1035_s21 = sphi %s1090_s21, %s1389_s21  }
   0xd   : > { %s32_s27 = ssub.s32 %s1047_s24, %s1112_s26  ;;  %s35_s28 = sadd.s32 1, %s1043_s23 }
   0xe   : > { %p33_p0 = scmp.eq.s32.totalorder %s32_s27, 0  ;;  %p42_p1 = scmp.ne.s32.totalorder %s1043_s23, %s1039_s22 }
   0xf   : > { %p43_p2 = scmp.eq.s32.totalorder %s1047_s24, 0  ;;  %p48_p3 = scmp.ne.s32.totalorder %s1039_s22, %s1035_s21 }
  0x10   : > { %s1122_s29 = scalar_select %p33_p0, %s1043_s23, %s35_s28  }
  0x11   : > { %p44_p4 = por %p43_p2, %p42_p1  ;;  %p49_p5 = scmp.eq.s32.totalorder %s1109_s25, 0 }
  0x12   : > { %p774_p6 = scmp.lt.s32.totalorder %s1047_s24, 3  ;;  %s1131_s7 = sand.u32 1, %s1043_s23  }
  0x13   : > { %p1126_p7 = por %p49_p5, %p48_p3  ;;  %s1134_s8 = sshll.u32 %s1131_s7, 3 }
  0x14   : > { %s1137_s9 = sshll.u32 %s1047_s24, 7  ;;  %p1139_p8 = pnand %p774_p6, %p44_p4 }
  0x15   : > { %s1374_s30 = scalar_select %p1126_p7, 1, 0 }
  0x16   : > { %s1375_s10 = scalar_select %p1139_p8, 1, 0 }
  0x17   : > { %s246_s11 = sand.u32 1, %s1047_s24   ;;  %s1376_s1 = sld [smem:[#allocation16_spill]] }
  0x18   : > { %s250_s15 = scalar_lea.vmem [#allocation4], %s1134_s8  ;;  %s1157_s17 = scalar_lea.sflag [#allocation5], %s246_s11 }
  0x19   : > { %s257_s16 = sshll.u32 %s250_s15, 4  ;;  %p1163_p12 = pneg %p1139_p8  ;;  %s1152_s16 = int_to_ptr.vmem [resolvable:$true] %s257_s16 }
  0x1d   : > { %s1148_s14 = scalar_lea.hbm %s1376_s1, %s1137_s9  ;;  %s826_s27 = scalar_lea.hbm %s1376_s1, 384 }
  0x1e   : > { %s821_s18 = scalar_lea.hbm %s1148_s14, 128  ;;  %p827_p1 = scmp.lt.u32.totalorder %s1148_s14, %s1376_s1 }
  0x1f   : > { %p822_p11 = scmp.ne.s32.totalorder %s1148_s14, %s821_s18  ;;  %p828_p2 = scmp.lt.u32.totalorder %s826_s27, %s821_s18 }
  0x20   : > { %p830_p4 = scmp.lt.u32.totalorder %s821_s18, %s1148_s14 }
  0x21   : > { %p824_p13 = pnand %p1163_p12, %p822_p11  ;;  %p829_p3 = por %p828_p2, %p827_p1 }
  0x23   : > { %p825_p0 = pneg %p824_p13  ;;  %p831_p5 = por %p830_p4, %p829_p3 }
  0x25   : > { %p832_p6 = pnand %p831_p5, %p825_p0 }
  0x27   : > { %835 = shalt.err (!%p832_p6)
}
  0x28   : > { %s836_s13 = scalar_lea.vmem %s1152_s16, 128  ;;  %s1049_s15 = smov [#allocation4]  }
  0x29   : > { %p837_p11 = scmp.ne.s32.totalorder %s1152_s16, %s836_s13  ;;  %s841_s20 = sshll.u32 %s1049_s15, 4  ;;  %s842_s20 = int_to_ptr.vmem [resolvable:$false] %s841_s20 }
  0x2a   : > { %s843_s21 = scalar_lea.vmem %s842_s20, 256  ;;  %p844_p10 = scmp.lt.s32.totalorder %s1152_s16, %s842_s20 }
  0x2b   : > { %p839_p13 = pnand %p837_p11, %p1163_p12  ;;  %p845_p7 = scmp.lt.s32.totalorder %s843_s21, %s836_s13 }
  0x2d   : > { %p840_p9 = pneg %p839_p13  ;;  %p846_p1 = por %p845_p7, %p844_p10 }
  0x2f   : > { %p847_p2 = pnand %p846_p1, %p840_p9 }
  0x31   : > { %850 = shalt.err (!%p847_p2)
}
  0x32   : > { %761 = dma.hbm_to_vmem [thread:$0]  (!%p1139_p8), %s1148_s14, 128, %s1152_s16, %s1157_s17  }
  0x33   : > { %p1378_p0 = scmp.lt.s32.totalorder %s1047_s24, 4  ;;  %p1379_p3 = scmp.ge.s32.totalorder %s1047_s24, 1 }
  0x34   : > { %s1381_s3 = sld [smem:[#allocation17_spill]]  ;;  %s286_s13 = scalar_lea.vmem [#allocation7], %s1134_s8 }
  0x35   : > { %p1191_p4 = pnand %p1379_p3, %p1378_p0  ;;  %s293_s15 = sshll.u32 %s286_s13, 4  ;;  %s294_s15 = int_to_ptr.vmem [resolvable:$true] %s293_s15 }
  0x36   : > { %s1204_s14 = scalar_lea.sflag [#allocation8], %s246_s11 }
  0x37   : > { %s1380_s18 = scalar_select %p1191_p4, 1, 0 }
  0x3a   : > { %s1199_s12 = scalar_lea.hbm %s1381_s3, %s1137_s9  ;;  %s856_s27 = scalar_lea.hbm %s1381_s3, 384 }
  0x3b   : > { %s851_s16 = scalar_lea.hbm %s1199_s12, 128  ;;  %p857_p5 = scmp.lt.u32.totalorder %s1199_s12, %s1381_s3 }
  0x3c   : > { %p852_p7 = scmp.ne.s32.totalorder %s1199_s12, %s851_s16  ;;  %p858_p6 = scmp.lt.u32.totalorder %s856_s27, %s851_s16 }
  0x3d   : > { %p860_p13 = scmp.lt.u32.totalorder %s851_s16, %s1199_s12 }
  0x3e   : > { %p854_p9 = pnand %p852_p7, %p1163_p12  ;;  %p859_p11 = por %p858_p6, %p857_p5 }
  0x40   : > { %p855_p10 = pneg %p854_p9  ;;  %p861_p1 = por %p860_p13, %p859_p11 }
  0x42   : > { %p862_p2 = pnand %p861_p1, %p855_p10 }
  0x44   : > { %865 = shalt.err (!%p862_p2)
}
  0x45   : > { %s866_s24 = scalar_lea.vmem %s294_s15, 128  ;;  %s1050_s11 = smov [#allocation7]  }
  0x46   : > { %p867_p0 = scmp.ne.s32.totalorder %s294_s15, %s866_s24  ;;  %s871_s13 = sshll.u32 %s1050_s11, 4  ;;  %s872_s13 = int_to_ptr.vmem [resolvable:$false] %s871_s13 }
  0x47   : > { %s873_s20 = scalar_lea.vmem %s872_s13, 256  ;;  %p874_p9 = scmp.lt.s32.totalorder %s294_s15, %s872_s13 }
  0x48   : > { %p869_p3 = pnand %p867_p0, %p1163_p12  ;;  %p875_p4 = scmp.lt.s32.totalorder %s873_s20, %s866_s24 }
  0x4a   : > { %p870_p7 = pneg %p869_p3  ;;  %p876_p8 = por %p875_p4, %p874_p9 }
  0x4c   : > { %p877_p5 = pnand %p876_p8, %p870_p7 }
  0x4e   : > { %880 = shalt.err (!%p877_p5)
}
  0x4f   : > { %p1382_p6 = scmp.ne.s32.totalorder %s1375_s10, 0  ;;  %s1228_s21 = scalar_lea.hbm %s1362_s0, %s1137_s9 }
  0x50   : > { %s232_s27 = scalar_lea.vmem [#allocation2], %s1134_s8  ;;  %s229_s24 = scalar_lea.sflag [#allocation3], %s1131_s7 }
  0x51   : > { %767 = dma.hbm_to_vmem [thread:$0]  (!%p1382_p6), %s1199_s12, 128, %s294_s15, %s1204_s14  }
  0x52   : > { %s239_s28 = sshll.u32 %s232_s27, 4  ;;  %s881_s11 = scalar_lea.hbm %s1228_s21, 128  ;;  %s240_s28 = int_to_ptr.vmem [resolvable:$true] %s239_s28 }
  0x53   : > { %p882_p8 = scmp.ne.s32.totalorder %s1228_s21, %s881_s11  ;;  %s886_s15 = scalar_lea.hbm %s1362_s0, 384 }
  0x54   : > { %p887_p11 = scmp.lt.u32.totalorder %s1228_s21, %s1362_s0  ;;  %p888_p13 = scmp.lt.u32.totalorder %s886_s15, %s881_s11 }
  0x55   : > { %p884_p4 = pnand %p882_p8, %p1163_p12  ;;  %p890_p2 = scmp.lt.u32.totalorder %s881_s11, %s1228_s21 }
  0x56   : > { %p889_p1 = por %p888_p13, %p887_p11 }
  0x57   : > { %p885_p10 = pneg %p884_p4 }
  0x58   : > { %p891_p0 = por %p890_p2, %p889_p1 }
  0x5a   : > { %p892_p3 = pnand %p891_p0, %p885_p10 }
  0x5c   : > { %895 = shalt.err (!%p892_p3)
}
  0x5d   : > { %s896_s16 = scalar_lea.vmem %s240_s28, 128  ;;  %s1051_s27 = smov [#allocation2]  }
  0x5e   : > { %p897_p7 = scmp.ne.s32.totalorder %s240_s28, %s896_s16  ;;  %s901_s3 = sshll.u32 %s1051_s27, 4  ;;  %s902_s3 = int_to_ptr.vmem [resolvable:$false] %s901_s3 }
  0x5f   : > { %s903_s13 = scalar_lea.vmem %s902_s3, 256  ;;  %p904_p8 = scmp.lt.s32.totalorder %s240_s28, %s902_s3 }
  0x60   : > { %p899_p9 = pnand %p897_p7, %p1163_p12  ;;  %p905_p4 = scmp.lt.s32.totalorder %s903_s13, %s896_s16 }
  0x62   : > { %p900_p5 = pneg %p899_p9  ;;  %p906_p6 = por %p905_p4, %p904_p8 }
  0x64   : > { %p907_p11 = pnand %p906_p6, %p900_p5 }
  0x66   : > { %910 = shalt.err (!%p907_p11)
}
  0x67   : > { %p1383_p13 = scmp.ne.s32.totalorder %s1375_s10, 0  ;;  %s1253_s15 = scalar_lea.hbm %s1364_s2, %s1137_s9 }
  0x68   : > { %s268_s3 = scalar_lea.vmem [#allocation6], %s1134_s8  ;;  %s911_s1 = scalar_lea.hbm %s1253_s15, 128 }
  0x69   : > { %758 = dma.hbm_to_vmem [thread:$0]  (!%p1383_p13), %s1228_s21, 128, %s240_s28, %s229_s24  }
  0x6a   : > { %s275_s20 = sshll.u32 %s268_s3, 4  ;;  %p912_p6 = scmp.ne.s32.totalorder %s1253_s15, %s911_s1  ;;  %s276_s20 = int_to_ptr.vmem [resolvable:$true] %s275_s20 }
  0x6b   : > { %s916_s21 = scalar_lea.hbm %s1364_s2, 384  ;;  %p917_p2 = scmp.lt.u32.totalorder %s1253_s15, %s1364_s2 }
  0x6c   : > { %p914_p10 = pnand %p912_p6, %p1163_p12  ;;  %p918_p0 = scmp.lt.u32.totalorder %s916_s21, %s911_s1 }
  0x6d   : > { %p920_p7 = scmp.lt.u32.totalorder %s911_s1, %s1253_s15 }
  0x6e   : > { %p915_p1 = pneg %p914_p10  ;;  %p919_p3 = por %p918_p0, %p917_p2 }
  0x70   : > { %p921_p9 = por %p920_p7, %p919_p3 }
  0x72   : > { %p922_p5 = pnand %p921_p9, %p915_p1 }
  0x74   : > { %925 = shalt.err (!%p922_p5)
}
  0x75   : > { %s926_s13 = scalar_lea.vmem %s276_s20, 128  ;;  %s1052_s11 = smov [#allocation6]  }
  0x76   : > { %p927_p8 = scmp.ne.s32.totalorder %s276_s20, %s926_s13  ;;  %s931_s12 = sshll.u32 %s1052_s11, 4  ;;  %s932_s12 = int_to_ptr.vmem [resolvable:$false] %s931_s12 }
  0x77   : > { %s933_s3 = scalar_lea.vmem %s932_s12, 256  ;;  %p934_p6 = scmp.lt.s32.totalorder %s276_s20, %s932_s12 }
  0x78   : > { %p929_p4 = pnand %p927_p8, %p1163_p12  ;;  %p935_p10 = scmp.lt.s32.totalorder %s933_s3, %s926_s13 }
  0x7a   : > { %p930_p11 = pneg %p929_p4  ;;  %p936_p13 = por %p935_p10, %p934_p6 }
  0x7c   : > { %p937_p0 = pnand %p936_p13, %p930_p11 }
  0x7e   : > { %940 = shalt.err (!%p937_p0)
}
  0x7f   : > { %p1384_p2 = scmp.ne.s32.totalorder %s1375_s10, 0  ;;  %s1278_s27 = scalar_lea.hbm %s1366_s4, %s1137_s9 }
  0x80   : > { %s304_s21 = scalar_lea.vmem [#allocation9], %s1134_s8  ;;  %s941_s24 = scalar_lea.hbm %s1278_s27, 128 }
  0x81   : > { %764 = dma.hbm_to_vmem [thread:$0]  (!%p1384_p2), %s1253_s15, 128, %s276_s20, %s1157_s17  }
  0x82   : > { %s311_s28 = sshll.u32 %s304_s21, 4  ;;  %p942_p13 = scmp.ne.s32.totalorder %s1278_s27, %s941_s24  ;;  %s312_s28 = int_to_ptr.vmem [resolvable:$true] %s311_s28 }
  0x83   : > { %s946_s17 = scalar_lea.hbm %s1366_s4, 384  ;;  %p947_p7 = scmp.lt.u32.totalorder %s1278_s27, %s1366_s4 }
  0x84   : > { %p944_p1 = pnand %p942_p13, %p1163_p12  ;;  %p948_p9 = scmp.lt.u32.totalorder %s946_s17, %s941_s24 }
  0x85   : > { %p950_p8 = scmp.lt.u32.totalorder %s941_s24, %s1278_s27 }
  0x86   : > { %p945_p3 = pneg %p944_p1  ;;  %p949_p5 = por %p948_p9, %p947_p7 }
  0x88   : > { %p951_p4 = por %p950_p8, %p949_p5 }
  0x8a   : > { %p952_p11 = pnand %p951_p4, %p945_p3 }
  0x8c   : > { %955 = shalt.err (!%p952_p11)
}
  0x8d   : > { %s956_s12 = scalar_lea.vmem %s312_s28, 128  ;;  %s1053_s3 = smov [#allocation9]  }
  0x8e   : > { %p957_p6 = scmp.ne.s32.totalorder %s312_s28, %s956_s12  ;;  %s961_s1 = sshll.u32 %s1053_s3, 4  ;;  %s962_s1 = int_to_ptr.vmem [resolvable:$false] %s961_s1 }
  0x8f   : > { %s963_s16 = scalar_lea.vmem %s962_s1, 256  ;;  %p964_p13 = scmp.lt.s32.totalorder %s312_s28, %s962_s1 }
  0x90   : > { %p959_p10 = pnand %p957_p6, %p1163_p12  ;;  %p965_p1 = scmp.lt.s32.totalorder %s963_s16, %s956_s12 }
  0x92   : > { %p960_p0 = pneg %p959_p10  ;;  %p966_p2 = por %p965_p1, %p964_p13 }
  0x94   : > { %p967_p7 = pnand %p966_p2, %p960_p0 }
  0x96   : > { %970 = shalt.err (!%p967_p7)
}
  0x97   : > { %p1385_p9 = scmp.ne.s32.totalorder %s1375_s10, 0  ;;  %s1303_s13 = scalar_lea.hbm %s1367_s5, %s1137_s9 }
  0x98   : > { %s322_s11 = scalar_lea.vmem [#allocation10], %s1134_s8  ;;  %s319_s15 = scalar_lea.sflag [#allocation11], %s1131_s7 }
  0x99   : > { %770 = dma.hbm_to_vmem [thread:$0]  (!%p1385_p9), %s1278_s27, 128, %s312_s28, %s1204_s14  }
  0x9a   : > { %s329_s17 = sshll.u32 %s322_s11, 4  ;;  %s971_s20 = scalar_lea.hbm %s1303_s13, 128  ;;  %s330_s17 = int_to_ptr.vmem [resolvable:$true] %s329_s17 }
  0x9b   : > { %p972_p2 = scmp.ne.s32.totalorder %s1303_s13, %s971_s20  ;;  %s976_s27 = scalar_lea.hbm %s1367_s5, 384 }
  0x9c   : > { %p977_p8 = scmp.lt.u32.totalorder %s1303_s13, %s1367_s5  ;;  %p978_p4 = scmp.lt.u32.totalorder %s976_s27, %s971_s20 }
  0x9d   : > { %p974_p3 = pnand %p972_p2, %p1163_p12  ;;  %p980_p6 = scmp.lt.u32.totalorder %s971_s20, %s1303_s13 }
  0x9e   : > { %p979_p11 = por %p978_p4, %p977_p8 }
  0x9f   : > { %p975_p5 = pneg %p974_p3 }
  0xa0   : > { %p981_p10 = por %p980_p6, %p979_p11 }
  0xa2   : > { %p982_p0 = pnand %p981_p10, %p975_p5 }
  0xa4   : > { %985 = shalt.err (!%p982_p0)
}
  0xa5   : > { %s986_s7 = scalar_lea.vmem %s330_s17, 128  ;;  %s1054_s8 = smov [#allocation10]  }
  0xa6   : > { %p987_p13 = scmp.ne.s32.totalorder %s330_s17, %s986_s7  ;;  %s991_s3 = sshll.u32 %s1054_s8, 4  ;;  %s992_s3 = int_to_ptr.vmem [resolvable:$false] %s991_s3 }
  0xa7   : > { %s993_s1 = scalar_lea.vmem %s992_s3, 256  ;;  %p994_p2 = scmp.lt.s32.totalorder %s330_s17, %s992_s3 }
  0xa8   : > { %p989_p1 = pnand %p987_p13, %p1163_p12  ;;  %p995_p3 = scmp.lt.s32.totalorder %s993_s1, %s986_s7 }
  0xaa   : > { %p990_p7 = pneg %p989_p1  ;;  %p996_p9 = por %p995_p3, %p994_p2 }
  0xac   : > { %p997_p4 = pnand %p996_p9, %p990_p7 }
  0xae   : > { %1000 = shalt.err (!%p997_p4)
}
  0xaf   : > { %p1386_p8 = scmp.ne.s32.totalorder %s1375_s10, 0  ;;  %p1387_p5 = scmp.ne.s32.totalorder %s1380_s18, 0 }
  0xb0   : > { %s340_s19 = sand.u32 (!%p1387_p5), 1, %s1039_s22   ;;  %p1388_p12 = scmp.ne.s32.totalorder (!%p1387_p5), %s1374_s30, 0 }
  0xb1   : > { %773 = dma.hbm_to_vmem [thread:$0]  (!%p1386_p8), %s1303_s13, 128, %s330_s17, %s319_s15  }
  0xb2   : > { %338 = sbr.rel (%p1387_p5) target bundleno = 412 (0x19c), region = 44  ;;  %s734_s16 = sshll.u32 (!%p1387_p5), %s340_s19, 3 }
  0xb3   : > { %s341_s21 = scalar_lea.sflag (!%p1387_p5), [#allocation3], %s340_s19  ;;  %s344_s24 = scalar_lea.vmem (!%p1387_p5), [#allocation2], %s734_s16 }
  0xb9   : > { %1018 = dma.done.wait (%p1388_p12), %s341_s21, 128  }
  0xba   : > { %1020 = vsyncadd (%p1388_p12), %s341_s21, 4294967168  ;;  %s349_s11 = sand.u32 1, %s1109_s25   ;;  %s353_s20 = scalar_lea.vmem [#allocation4], %s734_s16 }
  0xbb   : > { %s350_s10 = scalar_lea.sflag [#allocation5], %s349_s11 }
  0xbc   : > { %1022 = dma.done.wait (%p1388_p12), %s350_s10, 256  }
  0xbd   : > { %1024 = vsyncadd (%p1388_p12), %s350_s10, 4294967040  ;;  %s362_s18 = scalar_lea.vmem [#allocation6], %s734_s16  ;;  %s368_s13 = scalar_lea.sflag [#allocation8], %s349_s11 }
  0xbe   : > { %s371_s17 = scalar_lea.vmem [#allocation7], %s734_s16 }
  0xbf   : > { %1026 = dma.done.wait (%p1388_p12), %s368_s13, 256  }
  0xc0   : > { %1028 = vsyncadd (%p1388_p12), %s368_s13, 4294967040  ;;  %s380_s15 = scalar_lea.vmem [#allocation9], %s734_s16  ;;  %s386_s12 = scalar_lea.sflag [#allocation11], %s340_s19 }
  0xc1   : > { %s389_s14 = scalar_lea.vmem [#allocation10], %s734_s16 }
  0xc2   : > { %1030 = dma.done.wait (%p1388_p12), %s386_s12, 128  }
  0xc3   : > { %1032 = vsyncadd (%p1388_p12), %s386_s12, 4294967168  ;;  %v446_v0 = vld [vmem:[%s344_s24] sm:$0xff]  ;;  %v447_v1 = vld [vmem:[%s353_s20] sm:$0xff]  ;;  %p442_p9 = scmp.lt.s32.totalorder %s1109_s25, 2  ;;  %vm542_vm12 = vcmask 7168  }
  0xc4   : > { %v460_v2 = vld [vmem:[%s362_s18] sm:$0xff]  ;;  %v448_v3 = vsub.f32 %v446_v0, %v447_v1  ;;  %v473_v5 = vld [vmem:[%s371_s17] sm:$0xff] }
  0xc5   : > { %v461_v4 = vsub.f32 %v446_v0, %v460_v2  ;;  %v486_v6 = vld [vmem:[%s380_s15] sm:$0xff]  ;;  %v499_v7 = vld [vmem:[%s389_s14] sm:$0xff]  ;;  %v474_v8 = vsub.f32 %v446_v0, %v473_v5  ;;  %s1394_s25 = smov (!%p442_p9, %s1109_s25), 2 }
  0xc6   : > { %v487_v9 = vsub.f32 %v447_v1, %v486_v6  ;;  %v449_v10 = vadd.f32 1e-06, %v448_v3  ;;  %v500_v12 = vsub.f32 %v460_v2, %v499_v7  ;;  %s740_s30 = sshll.u32 %s1394_s25, 3 }
  0xc7   : > { %v462_v11 = vadd.f32 1e-06, %v461_v4  ;;  %v475_v13 = vadd.f32 1e-06, %v474_v8  ;;  %s445_s9 = scalar_lea.vmem %s1368_s6, %s740_s30 }
  0xc8   : > { %v488_v14 = vadd.f32 1e-06, %v487_v9  ;;  %v450_v15 = vmul.f32 %v449_v10, %v449_v10  ;;  %v501_v18 = vadd.f32 1e-06, %v500_v12 }
  0xc9   : > { %v476_v16 = vmul.f32 %v475_v13, %v475_v13  ;;  %v463_v17 = vmul.f32 %v462_v11, %v462_v11 }
  0xca   : > { %451 = vadd.xlane.f32.xlu0 %v450_v15  ;;  %v489_v19 = vmul.f32 %v488_v14, %v488_v14  ;;  %v502_v20 = vmul.f32 %v501_v18, %v501_v18 }
  0xcb   : > { %477 = vadd.xlane.f32.xlu1 %v476_v16 }
  0xce   : > { %464 = vadd.xlane.f32.xlu0 %v463_v17 }
  0xcf   : > { %490 = vadd.xlane.f32.xlu1 %v489_v19 }
  0xd2   : > { %503 = vadd.xlane.f32.xlu0 %v502_v20 }
 0x157   : > { %v452_v21 = vpop.xlane.xlu0 %451 }
 0x158   : > { %807 = vrsqrt.f32 %v452_v21  ;;  %vm455_vm0 = vcmp.eq.f32.partialorder %v452_v21, inf  ;;  %v458_v28 = vand.u32 2147483648, %v452_v21  ;;  %vm457_vm2 = vcmp.eq.f32.partialorder %v452_v21, 0.0  ;;  %v478_v34 = vpop.xlane.xlu1 %477 }
 0x159   : > { %vm481_vm4 = vcmp.eq.f32.partialorder %v478_v34, inf  ;;  %vm483_vm6 = vcmp.eq.f32.partialorder %v478_v34, 0.0  ;;  %v484_v49 = vand.u32 2147483648, %v478_v34 }
 0x15b   : > { %v465_v22 = vpop.xlane.xlu0 %464 }
 0x15c   : > { %809 = vrsqrt.f32 %v465_v22  ;;  %vm468_vm1 = vcmp.eq.f32.partialorder %v465_v22, inf  ;;  %v471_v29 = vand.u32 2147483648, %v465_v22  ;;  %vm470_vm3 = vcmp.eq.f32.partialorder %v465_v22, 0.0  ;;  %v491_v38 = vpop.xlane.xlu1 %490 }
 0x15d   : > { %811 = vrsqrt.f32 %v478_v34  ;;  %vm494_vm5 = vcmp.eq.f32.partialorder %v491_v38, inf  ;;  %v497_v50 = vand.u32 2147483648, %v491_v38  ;;  %vm496_vm7 = vcmp.eq.f32.partialorder %v491_v38, 0.0 }
 0x15e   : > { %813 = vrsqrt.f32 %v491_v38 }
 0x15f   : > { %v504_v41 = vpop.xlane.xlu0 %503 }
 0x160   : > { %vm507_vm8 = vcmp.eq.f32.partialorder %v504_v41, inf  ;;  %v510_v57 = vand.u32 2147483648, %v504_v41  ;;  %vm509_vm9 = vcmp.eq.f32.partialorder %v504_v41, 0.0 }
 0x162   : > { %v808_v23 = vpop.eup %807 }
 0x163   : > { %v454_v24 = vmul.f32 %v808_v23, %v452_v21 }
 0x165   : > { %v456_v26 = vsel %vm455_vm0, %v452_v21, %v454_v24 }
 0x166   : > { %v810_v25 = vpop.eup %809  ;;  %v459_v31 = vsel %vm457_vm2, %v458_v28, %v456_v26 }
 0x167   : > { %v467_v27 = vmul.f32 %v810_v25, %v465_v22  ;;  %v812_v42 = vpop.eup %811  ;;  %v512_v4 = vmul.f32 0.1, %v459_v31 }
 0x168   : > { %v814_v43 = vpop.eup %813  ;;  %v480_v45 = vmul.f32 %v812_v42, %v478_v34 }
 0x169   : > { %v469_v30 = vsel %vm468_vm1, %v465_v22, %v467_v27  ;;  %v493_v46 = vmul.f32 %v814_v43, %v491_v38  ;;  %v537_v9 = vmul.f32 %v512_v4, %v512_v4 }
 0x16a   : > { %v472_v32 = vsel %vm470_vm3, %v471_v29, %v469_v30  ;;  %v482_v51 = vsel %vm481_vm4, %v478_v34, %v480_v45 }
 0x16b   : > { %v513_v33 = vsub.f32 %v459_v31, %v472_v32  ;;  %v495_v52 = vsel %vm494_vm5, %v491_v38, %v493_v46  ;;  %v485_v55 = vsel %vm483_vm6, %v484_v49, %v482_v51 }
 0x16c   : > { %v498_v56 = vsel %vm496_vm7, %v497_v50, %v495_v52 }
 0x16d   : > { %v514_v35 = vadd.f32 1.0, %v513_v33  ;;  %v534_v60 = vadd.f32 %v498_v56, %v485_v55 }
 0x16f   : > { %v516_v36 = vsub.f32 0.0, %v514_v35  ;;  %v515_v3 = vmax.f32 %v514_v35, 0.0 }
 0x171   : > { %v519_v37 = vand.u32 2147483647, %v516_v36  ;;  %vm517_vm11 = vcmp.ne.f32.partialorder %v516_v36, %v516_v36 }
 0x173   : > { %v520_v39 = vsub.f32 0.0, %v519_v37 }
 0x175   : > { %v521_v40 = vmul.f32 1.442695, %v520_v39 }
 0x177   : > { %815 = vpow2.f32 %v521_v40 }
 0x178   : > { %817 = vrsqrt.f32 %v504_v41 }
 0x181   : > { %v816_v44 = vpop.eup %815 }
 0x182   : > { %v818_v47 = vpop.eup %817  ;;  %v523_v48 = vadd.f32 1.0, %v816_v44  ;;  %v526_v54 = vmul.f32 -0.5, %v816_v44  ;;  %v529_v61 = vand.u32 2147483647, %v816_v44 }
 0x183   : > { %v506_v53 = vmul.f32 %v818_v47, %v504_v41 }
 0x184   : > { %819 = vlog2.f32 %v523_v48  ;;  %v527_v59 = vadd.f32 1.0, %v526_v54  ;;  %vm530_vm10 = vcmp.lt.f32.partialorder %v529_v61, 0.0004427343 }
 0x185   : > { %v508_v58 = vsel %vm507_vm8, %v504_v41, %v506_v53 }
 0x186   : > { %v511_v62 = vsel %vm509_vm9, %v510_v57, %v508_v58  ;;  %v528_v1 = vmul.f32 %v816_v44, %v527_v59 }
 0x187   : > { %v535_v2 = vadd.f32 %v534_v60, %v511_v62 }
 0x189   : > { %v536_v7 = vmul.f32 0.33333334, %v535_v2 }
 0x18b   : > { %v540_v12 = vmul.f32 %v536_v7, %v536_v7 }
 0x18e   : > { %v820_v63 = vpop.eup %819 }
 0x18f   : > { %v525_v0 = vmul.f32 0.6931472, %v820_v63 }
 0x191   : > { %v531_v5 = vsel %vm530_vm10, %v528_v1, %v525_v0 }
 0x192   : > { %v532_v6 = vadd.f32 %v531_v5, %v515_v3 }
 0x194   : > { %v533_v8 = vsel %vm517_vm11, %v514_v35, %v532_v6 }
 0x195   : > { %v538_v10 = vmul.f32 %v533_v8, %v533_v8 }
 0x197   : > { %v539_v11 = vadd.f32 %v538_v10, %v537_v9 }
 0x199   : > { %v541_v13 = vadd.f32 %v540_v12, %v539_v11 }
 0x19b   : > { %543 = vst.msk [vmem:[%s445_s9] sm:$0xff] %vm542_vm12, %v541_v13 }
 0x19c PF: > { %p25_p11 = scmp.ge.s32.totalorder %s1112_s26, 5   ;;  %s1389_s21 = smov %s1039_s22 }
 0x19d   : > { %s1390_s22 = smov %s1043_s23  ;;  %s1391_s23 = smov %s1122_s29 }
 0x19e   : > { %s1392_s24 = smov %s1112_s26  ;;  %27 = sbr.rel (!%p25_p11) target bundleno = 12 (0xc), region = 145 }
 0x1a5   :  { %563 = vsyncpa [#allocation3], 1 }
 0x1a6   :  { %565 = vsyncpa [#allocation3 + $0x1], 1 }
 0x1a7   :  { %566 = vsyncpa [#allocation5], 1 }
 0x1a8   :  { %568 = vsyncpa [#allocation5 + $0x1], 1 }
 0x1a9   :  { %569 = vsyncpa [#allocation8], 1 }
 0x1aa   :  { %571 = vsyncpa [#allocation8 + $0x1], 1 }
 0x1ab   :  { %572 = vsyncpa [#allocation11], 1 }
 0x1ac   :  { %574 = vsyncpa [#allocation11 + $0x1], 1 }

</bundles_post_ra>
